<compile_context>
chip_gen: v7x
topology: tpu7x:2x2x1
jax: 0.10.0
libtpu: 0.0.40
codegen_flags: <defaults>
</compile_context>

<pallas_src>
import functools

import jax
import jax.numpy as jnp
from jax import lax
from jax.experimental import pallas as pl
from jax.experimental.pallas import tpu as pltpu

_BN_EPS = 1e-5
_LEAKY_SLOPE = 0.1


# --------------------------------------------------------------------------------------
# helpers
# --------------------------------------------------------------------------------------
def _round_up(a, m):
    return (a + m - 1) // m * m


def _pick_tile(lp):
    # Lane-dense spatial tiles: multiples of 128 so output stores are full vst,
    # capped at 2048 lanes so (in + out) blocks double-buffer comfortably even
    # under v7x's 64 MiB VMEM.
    for t in (2048, 1024, 512, 256, 128):
        if lp % t == 0:
            return t
    return lp  # unreachable: lp is always rounded up to a multiple of 128


def _fold_bn_1x1(blk):
    """Fold eval-mode BN into a 1x1 conv: returns (W_eff[Co,Ci], b_eff[Co])."""
    scale = blk['g'] / jnp.sqrt(blk['v'] + _BN_EPS)
    return blk['w'] * scale[:, None], blk['b'] - blk['m'] * scale


def _im2col3x3(x4):
    """(N, C, H, W) -> (N, 9*C, H*W) patches of the zero-padded 3x3 neighbourhood."""
    n, c, h, w = x4.shape
    xp = jnp.pad(x4, ((0, 0), (0, 0), (1, 1), (1, 1)))
    cols = [xp[:, :, dy:dy + h, dx:dx + w] for dy in range(3) for dx in range(3)]
    return jnp.stack(cols, axis=1).reshape(n, 9 * c, h * w)


# --------------------------------------------------------------------------------------
# Kernel 1: folded-BN conv as GEMM + bias + (optional) LeakyReLU(0.1)
# --------------------------------------------------------------------------------------
def _gemm_bias_act_kernel(x_ref, w_ref, b_ref, o_ref, *, leaky):
    # x: (1, Ci, T)   w: (Co, Ci)   b: (Co, 1)   o: (1, Co, T)
    y = jnp.dot(w_ref[...], x_ref[0], preferred_element_type=jnp.float32)
    y = y + b_ref[...]
    if leaky:
        y = jnp.where(y > 0, y, _LEAKY_SLOPE * y)
    o_ref[0] = y.astype(o_ref.dtype)


def _gemm_bias_act(x, w, b, *, leaky=True):
    """x: (N, Ci, L), w: (Co, Ci), b: (Co,) -> (N, Co, L)."""
    n, ci, l = x.shape
    co = w.shape[0]
    lp = _round_up(l, 128)
    if lp != l:
        x = jnp.pad(x, ((0, 0), (0, 0), (0, lp - l)))
    t = _pick_tile(lp)
    grid = (n, lp // t)

    itemsize = jnp.dtype(x.dtype).itemsize
    cost = pl.CostEstimate(
        flops=2 * n * co * ci * lp,
        transcendentals=0,
        bytes_accessed=(n * ci * lp + n * co * lp + co * ci + co) * itemsize,
    )

    out = pl.pallas_call(
        functools.partial(_gemm_bias_act_kernel, leaky=leaky),
        out_shape=jax.ShapeDtypeStruct((n, co, lp), x.dtype),
        grid_spec=pltpu.PrefetchScalarGridSpec(
            num_scalar_prefetch=0,
            grid=grid,
            in_specs=[
                pl.BlockSpec((1, ci, t), lambda i, j: (i, 0, j)),
                pl.BlockSpec((co, ci), lambda i, j: (0, 0)),
                pl.BlockSpec((co, 1), lambda i, j: (0, 0)),
            ],
            out_specs=pl.BlockSpec((1, co, t), lambda i, j: (i, 0, j)),
        ),
        compiler_params=pltpu.CompilerParams(
            dimension_semantics=("parallel", "parallel")),
        cost_estimate=cost,
    )(x, w.astype(x.dtype), b.reshape(co, 1).astype(x.dtype))

    if lp != l:
        out = out[..., :l]
    return out


# --------------------------------------------------------------------------------------
# Kernel 2: weight_levels 1x1 conv + softmax over levels + weighted feature fusion
# --------------------------------------------------------------------------------------
def _fusion_kernel(*refs, level):
    wl_refs = refs[0:level]                       # each (level, Cc)
    bl_ref = refs[level]                          # (level, 1)
    wm_refs = refs[level + 1: 2 * level + 1]      # each (1, Cc, T)
    x_refs = refs[2 * level + 1: 3 * level + 1]   # each (1, C, T)
    o_ref = refs[3 * level + 1]                   # (1, C, T)

    logits = None
    for i in range(level):
        d = jnp.dot(wl_refs[i][...], wm_refs[i][0],
                    preferred_element_type=jnp.float32)
        logits = d if logits is None else logits + d
    logits = logits + bl_ref[...]                 # (level, T)

    m = jnp.max(logits, axis=0, keepdims=True)
    e = jnp.exp(logits - m)
    p = e / jnp.sum(e, axis=0, keepdims=True)     # softmax over the level axis

    fused = None
    for i in range(level):
        term = x_refs[i][0] * p[i:i + 1, :]
        fused = term if fused is None else fused + term
    o_ref[0] = fused.astype(o_ref.dtype)


def _fuse_levels(wl, bl, wmaps, feats):
    """wl: (level, level*Cc), bl: (level,), wmaps: list of (N, Cc, L), feats: list of (N, C, L)."""
    level = len(feats)
    n, c, l = feats[0].shape
    cc = wmaps[0].shape[1]
    lp = _round_up(l, 128)
    if lp != l:
        pad = lambda a: jnp.pad(a, ((0, 0), (0, 0), (0, lp - l)))
        wmaps = [pad(a) for a in wmaps]
        feats = [pad(a) for a in feats]
    t = _pick_tile(lp)
    grid = (n, lp // t)

    wl_parts = [wl[:, i * cc:(i + 1) * cc] for i in range(level)]
    bl2 = bl.reshape(level, 1)

    itemsize = jnp.dtype(feats[0].dtype).itemsize
    cost = pl.CostEstimate(
        flops=2 * n * level * (level * cc) * lp + 4 * n * level * lp,
        transcendentals=n * level * lp,
        bytes_accessed=(n * level * (cc + c) * lp + n * c * lp) * itemsize,
    )

    in_specs = (
        [pl.BlockSpec((level, cc), lambda i, j: (0, 0)) for _ in range(level)]
        + [pl.BlockSpec((level, 1), lambda i, j: (0, 0))]
        + [pl.BlockSpec((1, cc, t), lambda i, j: (i, 0, j)) for _ in range(level)]
        + [pl.BlockSpec((1, c, t), lambda i, j: (i, 0, j)) for _ in range(level)]
    )

    out = pl.pallas_call(
        functools.partial(_fusion_kernel, level=level),
        out_shape=jax.ShapeDtypeStruct((n, c, lp), feats[0].dtype),
        grid_spec=pltpu.PrefetchScalarGridSpec(
            num_scalar_prefetch=0,
            grid=grid,
            in_specs=in_specs,
            out_specs=pl.BlockSpec((1, c, t), lambda i, j: (i, 0, j)),
        ),
        compiler_params=pltpu.CompilerParams(
            dimension_semantics=("parallel", "parallel")),
        cost_estimate=cost,
    )(*wl_parts, bl2, *wmaps, *feats)

    if lp != l:
        out = out[..., :l]
    return out


# --------------------------------------------------------------------------------------
# AdaptADD forward (Pallas path)
# --------------------------------------------------------------------------------------
def adapt_add_forward(params, xs, level):
    n, c, h, w = xs[0].shape
    l = h * w

    x0f = xs[0].reshape(n, c, l)   # contiguous metadata-only reshape of NCHW
    x1f = xs[1].reshape(n, c, l)

    wm_w, wm_b = _fold_bn_1x1(params['weight_map'])
    w0 = _gemm_bias_act(x0f, wm_w, wm_b, leaky=True)
    w1 = _gemm_bias_act(x1f, wm_w, wm_b, leaky=True)
    wmaps = [w0, w1]
    feats = [x0f, x1f]

    if level == 3:
        cl_w, cl_b = _fold_bn_1x1(params['compress_level'])
        c3 = xs[2].shape[1]
        x2f = xs[2].reshape(n, c3, l)
        mpf = _gemm_bias_act(x2f, cl_w, cl_b, leaky=True)     # "map" in the PyTorch code
        wmaps.append(_gemm_bias_act(mpf, wm_w, wm_b, leaky=True))
        feats.append(mpf)

    fused = _fuse_levels(params['weight_levels']['w'],
                         params['weight_levels']['b'], wmaps, feats)

    # expand: 3x3 conv + folded BN + LeakyReLU as im2col + GEMM kernel
    ex = params['expand']
    scale = ex['g'] / jnp.sqrt(ex['v'] + _BN_EPS)
    w3 = ex['w'] * scale[:, None, None, None]                 # (Co, C, 3, 3)
    out_ch = w3.shape[0]
    wmat = jnp.transpose(w3, (0, 2, 3, 1)).reshape(out_ch, 9 * c)
    bvec = ex['b'] - ex['m'] * scale

    xcol = _im2col3x3(fused.reshape(n, c, h, w))              # (N, 9*C, H*W)
    out = _gemm_bias_act(xcol, wmat, bvec, leaky=True)
    return out.reshape(n, out_ch, h, w)


# --------------------------------------------------------------------------------------
# Pure-JAX reference (independent formulation, high-precision matmuls)
# --------------------------------------------------------------------------------------
def _ref_bn(y, blk):
    sh = (1, -1, 1, 1)
    return ((y - blk['m'].reshape(sh)) / jnp.sqrt(blk['v'].reshape(sh) + _BN_EPS)
            * blk['g'].reshape(sh) + blk['b'].reshape(sh))


def _ref_leaky(y):
    return jnp.where(y > 0, y, _LEAKY_SLOPE * y)


def _ref_addconv1x1(x, blk):
    y = jnp.einsum('oc,nchw->nohw', blk['w'], x, precision=lax.Precision.HIGHEST)
    return _ref_leaky(_ref_bn(y, blk))


def ref_forward(params, xs, level):
    w0 = _ref_addconv1x1(xs[0], params['weight_map'])
    w1 = _ref_addconv1x1(xs[1], params['weight_map'])
    ws = [w0, w1]
    feats = [xs[0], xs[1]]
    if level == 3:
        mp = _ref_addconv1x1(xs[2], params['compress_level'])
        ws.append(_ref_addconv1x1(mp, params['weight_map']))
        feats.append(mp)
    wcat = jnp.concatenate(ws, axis=1)
    logits = jnp.einsum('oc,nchw->nohw', params['weight_levels']['w'], wcat,
                        precision=lax.Precision.HIGHEST)
    logits = logits + params['weight_levels']['b'].reshape(1, -1, 1, 1)
    lw = jax.nn.softmax(logits, axis=1)
    fused = sum(feats[i] * lw[:, i:i + 1] for i in range(level))
    y = lax.conv_general_dilated(fused, params['expand']['w'], window_strides=(1, 1),
                                 padding=((1, 1), (1, 1)),
                                 dimension_numbers=('NCHW', 'OIHW', 'NCHW'),
                                 precision=lax.Precision.HIGHEST)
    return _ref_leaky(_ref_bn(y, params['expand']))


# --------------------------------------------------------------------------------------
# Deterministic parameters (eval-mode BN running stats)
# --------------------------------------------------------------------------------------
def init_params(key, level, c, c3, cc, out_ch):
    ks = jax.random.split(key, 8)

    def bn(kk, nch):
        k1, k2, k3, k4 = jax.random.split(kk, 4)
        return dict(g=jax.random.uniform(k1, (nch,), minval=0.5, maxval=1.5),
                    b=0.1 * jax.random.normal(k2, (nch,)),
                    m=0.1 * jax.random.normal(k3, (nch,)),
                    v=jax.random.uniform(k4, (nch,), minval=0.5, maxval=1.5))

    params = {
        'weight_map': dict(w=0.3 * jax.random.normal(ks[0], (cc, c)), **bn(ks[1], cc)),
        'compress_level': dict(w=0.3 * jax.random.normal(ks[2], (c, c3)), **bn(ks[3], c)),
        'weight_levels': dict(w=0.3 * jax.random.normal(ks[4], (level, level * cc)),
                              b=0.1 * jax.random.normal(ks[5], (level,))),
        'expand': dict(w=0.2 * jax.random.normal(ks[6], (out_ch, c, 3, 3)), **bn(ks[7], out_ch)),
    }
    return params


if __name__ == "__main__":
    key = jax.random.PRNGKey(0)
    k_in, k_par = jax.random.split(key)

    level = 3
    N, C, C3, H, W = 2, 4, 8, 16, 16     # dim1 = dim2 = 4, dim3 = 8
    Cc = 16                              # compress_c (rfb=False)
    out_ch = 8

    kx = jax.random.split(k_in, 3)
    x0 = jax.random.normal(kx[0], (N, C, H, W), dtype=jnp.float32)
    x1 = jax.random.normal(kx[1], (N, C, H, W), dtype=jnp.float32)
    x2 = jax.random.normal(kx[2], (N, C3, H, W), dtype=jnp.float32)
    xs = [x0, x1, x2]

    params = init_params(k_par, level, C, C3, Cc, out_ch)

    y = adapt_add_forward(params, xs, level=level)
    y = jax.block_until_ready(y)

    ref = ref_forward(params, xs, level=level)
    assert y.shape == (N, out_ch, H, W)
    assert y.dtype == x0.dtype
    max_err = float(jnp.max(jnp.abs(y - ref)))
    assert bool(jnp.allclose(y, ref, atol=2e-2, rtol=2e-2)), f"mismatch, max abs err {max_err}"

    print("KERNEL_OK")
</pallas_src>

<mosaic_0001>
module attributes {stable_mosaic.version = 11 : i64} {
  func.func @_gemm_bias_act_kernel(%arg0: i32, %arg1: i32, %arg2: memref<1x4x256xf32, #tpu.memory_space<vmem>>, %arg3: memref<16x4xf32, #tpu.memory_space<vmem>>, %arg4: memref<16x1xf32, #tpu.memory_space<vmem>>, %arg5: memref<1x16x256xf32, #tpu.memory_space<vmem>>) attributes {dimension_semantics = [#tpu.dimension_semantics<parallel>, #tpu.dimension_semantics<parallel>], iteration_bounds = array<i64: 2, 1>, scalar_prefetch = 0 : i64, scratch_operands = 0 : i64, tpu.core_type = #tpu.core_type<tc>, window_params = [{transform_indices = @transform_0, window_bounds = array<i64: 1, 4, 256>}, {pipeline_mode = #tpu.pipeline_mode<synchronous>, transform_indices = @transform_1, window_bounds = array<i64: 16, 4>}, {pipeline_mode = #tpu.pipeline_mode<synchronous>, transform_indices = @transform_2, window_bounds = array<i64: 16, 1>}, {transform_indices = @transform_3, window_bounds = array<i64: 1, 16, 256>}]} {
    %c0 = arith.constant 0 : index
    %c0_0 = arith.constant 0 : index
    %0 = vector.load %arg3[%c0, %c0_0] : memref<16x4xf32, #tpu.memory_space<vmem>>, vector<16x4xf32>
    %c0_1 = arith.constant 0 : index
    %c0_2 = arith.constant 0 : index
    %c0_3 = arith.constant 0 : index
    %1 = vector.load %arg2[%c0_1, %c0_2, %c0_3] : memref<1x4x256xf32, #tpu.memory_space<vmem>>, vector<1x4x256xf32>
    %2 = vector.shape_cast %1 : vector<1x4x256xf32> to vector<4x256xf32>
    %cst = arith.constant dense<0.000000e+00> : vector<16x256xf32>
    %3 = tpu.matmul %0, %2, %cst {dimension_numbers = #tpu.dot_dimension_numbers<[1], [0], [0], [1], [0, 0, 1, 1], [], []>} : vector<16x4xf32>, vector<4x256xf32>, vector<16x256xf32> -> vector<16x256xf32>
    %c0_4 = arith.constant 0 : index
    %c0_5 = arith.constant 0 : index
    %4 = vector.load %arg4[%c0_4, %c0_5] : memref<16x1xf32, #tpu.memory_space<vmem>>, vector<16x1xf32>
    %5 = vector.broadcast %4 : vector<16x1xf32> to vector<16x256xf32>
    %6 = arith.addf %3, %5 : vector<16x256xf32>
    %cst_6 = arith.constant 0.000000e+00 : f32
    %7 = vector.broadcast %cst_6 : f32 to vector<16x256xf32>
    %8 = arith.cmpf ogt, %6, %7 : vector<16x256xf32>
    %cst_7 = arith.constant 1.000000e-01 : f32
    %9 = vector.broadcast %cst_7 : f32 to vector<16x256xf32>
    %10 = arith.mulf %9, %6 : vector<16x256xf32>
    %11 = arith.select %8, %6, %10 : vector<16x256xi1>, vector<16x256xf32>
    %c0_8 = arith.constant 0 : index
    %c0_9 = arith.constant 0 : index
    %c0_10 = arith.constant 0 : index
    %12 = vector.load %arg5[%c0_8, %c0_9, %c0_10] : memref<1x16x256xf32, #tpu.memory_space<vmem>>, vector<1x16x256xf32>
    %13 = vector.shape_cast %12 : vector<1x16x256xf32> to vector<16x256xf32>
    %14 = vector.shape_cast %11 : vector<16x256xf32> to vector<1x16x256xf32>
    tpu.vector_store %arg5[%c0_8, %c0_9, %c0_10], %14 {strides = array<i32>} : memref<1x16x256xf32, #tpu.memory_space<vmem>>, vector<1x16x256xf32>,
    return
  }
  func.func @transform_0(%arg0: i32, %arg1: i32) -> (i32, i32, i32) {
    %c0_i32 = arith.constant 0 : i32
    %c0_i32_0 = arith.constant 0 : i32
    return %arg0, %c0_i32, %arg1 : i32, i32, i32
  }
  func.func @transform_1(%arg0: i32, %arg1: i32) -> (i32, i32) {
    %c0_i32 = arith.constant 0 : i32
    %c0_i32_0 = arith.constant 0 : i32
    %c0_i32_1 = arith.constant 0 : i32
    return %c0_i32, %c0_i32_0 : i32, i32
  }
  func.func @transform_2(%arg0: i32, %arg1: i32) -> (i32, i32) {
    %c0_i32 = arith.constant 0 : i32
    %c0_i32_0 = arith.constant 0 : i32
    %c0_i32_1 = arith.constant 0 : i32
    return %c0_i32, %c0_i32_0 : i32, i32
  }
  func.func @transform_3(%arg0: i32, %arg1: i32) -> (i32, i32, i32) {
    %c0_i32 = arith.constant 0 : i32
    %c0_i32_0 = arith.constant 0 : i32
    return %arg0, %c0_i32, %arg1 : i32, i32, i32
  }
}

</mosaic_0001>

<bundles_post_ra>
// kernel: tpu_custom_call.1
= control target key start
LH: loop header
LB: loop body
LE: loop exit
PB: predicated region body
PF: predicated region fallthrough
CT: control target
= control target key end

     0   :  { %8 = vsyncpa [#allocation3], 0  ;;  %s735_s0 = inlined_call_operand.vmem [shape: f32[2,4,256], index: 0, kind: input, shape index: {}]   ;;  %s736_s1 = inlined_call_operand.vmem [shape: f32[16,4], index: 1, kind: input, shape index: {}]   ;;  %s737_s2 = inlined_call_operand.vmem [shape: f32[16,1], index: 2, kind: input, shape index: {}]   ;;  %s738_s3 = inlined_call_operand.hbm [shape: f32[2,16,256], index: 3, kind: output, shape index: {}]  }
   0x1   :  { %10 = vsyncpa [#allocation3 + $0x1], 0  ;;  %s604_s12 = smov 0   ;;  %s606_s13 = smov 0  }
   0x2   :  { %s608_s14 = smov 0   ;;  %s610_s15 = smov 0  }
   0x3   :  { %s612_s16 = smov 0   ;;  %s614_s17 = smov 0  }
   0x4 LB: > { %s417_s18 = sadd.s32 4294967295, %s577_s17   ;;  %s418_s19 = sadd.s32 4294967294, %s577_s17   ;;  %s577_s17 = sphi %s614_s17, %s16_s17   ;;  %s573_s16 = sphi %s612_s16, %s745_s16   ;;  %s569_s15 = sphi %s610_s15, %s744_s15   ;;  %s565_s14 = sphi %s608_s14, %s743_s14   ;;  %s561_s13 = sphi %s606_s13, %s742_s13   ;;  %s557_s12 = sphi %s604_s12, %s741_s12  }
   0x5   : > { %s28_s20 = sadd.s32 1, %s573_s16  ;;  %s107_s21 = sadd.s32 1, %s565_s14 }
   0x6   : > { %p30_p0 = scmp.ge.s32.totalorder %s28_s20, 2  ;;  %p117_p1 = scmp.ne.s32.totalorder %s565_s14, %s561_s13 }
   0x7   : > { %p118_p2 = scmp.eq.s32.totalorder %s417_s18, 1  ;;  %p123_p3 = scmp.ne.s32.totalorder %s561_s13, %s557_s12 }
   0x8   : > { %s747_s20 = smov (%p30_p0, %s28_s20), 0  ;;  %p124_p5 = scmp.eq.s32.totalorder %s418_s19, 1 }
   0x9   : > { %p644_p4 = por %p118_p2, %p117_p1  ;;  %s102_s23 = ssub.s32 %s573_s16, %s747_s20 }
   0xa   : > { %p421_p6 = scmp.ge.s32.totalorder %s577_s17, 1  ;;  %p105_p7 = scmp.eq.s32.totalorder %s102_s23, 0 }
   0xb   : > { %p651_p8 = por %p124_p5, %p123_p3  ;;  %p161_p9 = scmp.lt.s32.totalorder %s577_s17, 3 }
   0xc   : > { %s657_s25 = scalar_select %p105_p7, %s565_s14, %s107_s21  }
   0xd   : > { %p162_p10 = pnand %p421_p6, %p161_p9 }
   0xe   : > { %p190_p11 = scmp.lt.s32.totalorder (!%p162_p10), %s569_s15, 1  ;;  %v579_v0 = vmov (!%p162_p10), 0.0   ;;  %v203_v1 = vld [vmem:[%s737_s2] sm:$0xff] (!%p162_p10)  ;;  %v580_v2 = vmov (!%p162_p10), 0   ;;  %v204_v3 = vld [vmem:[%s737_s2 + $0x8] sm:$0xff] (!%p162_p10)  ;;  %vm224_vm0 = vcmask (!%p162_p10), 1043456  }
   0xf   : > { %165 = sbr.rel (%p162_p10) target bundleno = 264 (0x108), region = 32  ;;  %293 = vmatprep.mubr.f32.mxu0 (!%p162_p10), %v579_v0  ;;  %299 = vmatprep.mubr.f32.mxu1 (!%p162_p10), %v579_v0  ;;  %v200_v6 = vld [vmem:[%s736_s1] sm:$0xff] (!%p162_p10)  ;;  %vm217_vm1 = vcmask (!%p162_p10), 31744   ;;  %v201_v7 = vld [vmem:[%s736_s1 + $0x8] sm:$0xff] (!%p162_p10)  ;;  %s186_s18 = sand.u32 (!%p162_p10), 1, %s561_s13  }
  0x10   : > { %497 = vset.pattern.permute.xlu0 (!%p162_p10), %v580_v2  ;;  %s422_s19 = sshll.u32 (!%p162_p10), %s186_s18, 5  ;;  %s435_s26 = sshll.u32 (!%p162_p10), %s569_s15, 9 }
  0x11   : > { %207 = vperm.xlu0 (!%p162_p10), %497, %v203_v1   ;;  %s188_s21 = scalar_lea.vmem (!%p162_p10), [#allocation2], %s422_s19  ;;  %s581_s4 = smov (!%p162_p10), [#allocation2]  }
  0x12   : > { %s338_s23 = sshll.u32 (!%p162_p10), %s188_s21, 4  ;;  %s503_s5 = sshll.u32 (!%p162_p10), %s581_s4, 4  ;;  %s680_s23 = int_to_ptr.vmem [resolvable:$true] %s338_s23  ;;  %s504_s5 = int_to_ptr.vmem [resolvable:$false] %s503_s5 }
  0x13   : > { %s499_s30 = scalar_lea.vmem (!%p162_p10), %s680_s23, 512  ;;  %s505_s6 = scalar_lea.vmem (!%p162_p10), %s504_s5, 1024 }
  0x14   : > { %p500_p12 = scmp.ne.s32.totalorder (!%p162_p10), %s680_s23, %s499_s30  ;;  %p506_p1 = scmp.lt.s32.totalorder (!%p162_p10), %s680_s23, %s504_s5 }
  0x15   : > { %212 = vperm.xlu0 (!%p162_p10), %497, %v204_v3   ;;  %p507_p2 = scmp.lt.s32.totalorder (!%p162_p10), %s505_s6, %s499_s30 }
  0x16   : > { %s191_s28 = scalar_select %p190_p11, %s569_s15, 1 }
  0x17   : > { %s685_s15 = scalar_lea.hbm %s738_s3, %s435_s26  ;;  %p501_p13 = pnand %p500_p12, %p644_p4 }
  0x18   : > { %s434_s29 = sshll.u32 %s191_s28, 3  ;;  %p508_p3 = por %p507_p2, %p506_p1 }
  0x19   : > { %s197_s7 = scalar_lea.vmem %s735_s0, %s434_s29  ;;  %s689_s29 = scalar_lea.sflag [#allocation3], %s186_s18 }
  0x1a   : > { %v202_v4 = vld [vmem:[%s197_s7] sm:$0xff]  ;;  %p502_p0 = pneg %p501_p13 }
  0x1b   : > { %v216_v5 = vcombine.high %v202_v4, %v202_v4 }
  0x1c   : > { %p509_p5 = pnand %p508_p3, %p502_p0 }
  0x1d   : > { %425 = vmatprep.subr.msk.mxu0 %vm224_vm0, %v216_v5  ;;  %436 = vmatprep.subr.msk.mxu1 %vm224_vm0, %v216_v5 }
  0x1e   : > { %426 = vmatpush1.msk.msra.mxu0 %vm224_vm0, %v202_v4  ;;  %437 = vmatpush1.msk.msra.mxu1 %vm224_vm0, %v202_v4 }
  0x1f   : > { %427 = vmatmul.mubr.msk.f32.vlgmr.msra.gmra.mrb[0].mxu0 %vm217_vm1, %v200_v6  ;;  %428 = vmatmul.mubr.msk.f32.vlgmr.msra.gmra.mrb[0].mxu1 %vm217_vm1, %v201_v7 }
  0x90   : > { %v208_v8 = vpop.permute.xlu0 %207 }
  0x94   : > { %v213_v9 = vpop.permute.xlu0 %212 }
  0xf2   : > { %v295_v10 = vpop.f32.mrb[0].mxu0  ;;  %v301_v11 = vpop.f32.mrb[0].mxu1 }
  0xf3   : > { %v296_v12 = vadd.f32 %v295_v10, %v208_v8  ;;  %v302_v13 = vadd.f32 %v301_v11, %v213_v9  ;;  %v297_v14 = vpop.f32.mrb[1].mxu0  ;;  %v303_v15 = vpop.f32.mrb[1].mxu1 }
  0xf4   : > { %v298_v16 = vadd.f32 %v297_v14, %v208_v8  ;;  %v304_v17 = vadd.f32 %v303_v15, %v213_v9 }
  0xf5   : > { %vm306_vm2 = vcmp.gt.f32.partialorder %v296_v12, 0.0  ;;  %v310_v18 = vmul.f32 0.1, %v296_v12  ;;  %vm308_vm3 = vcmp.gt.f32.partialorder %v302_v13, 0.0  ;;  %v312_v19 = vmul.f32 0.1, %v302_v13 }
  0xf6   : > { %vm307_vm4 = vcmp.gt.f32.partialorder %v298_v16, 0.0  ;;  %v311_v20 = vmul.f32 0.1, %v298_v16  ;;  %vm309_vm5 = vcmp.gt.f32.partialorder %v304_v17, 0.0  ;;  %v313_v21 = vmul.f32 0.1, %v304_v17 }
  0xf7   : > { %v314_v22 = vsel %vm306_vm2, %v296_v12, %v310_v18  ;;  %v316_v23 = vsel %vm308_vm3, %v302_v13, %v312_v19 }
  0xf8   : > { %318 = vst [vmem:[%s188_s21] sm:$0xff] %v314_v22  ;;  %320 = vst [vmem:[%s188_s21 + $0x10] sm:$0xff] %v316_v23  ;;  %v315_v24 = vsel %vm307_vm4, %v298_v16, %v311_v20  ;;  %v317_v25 = vsel %vm309_vm5, %v304_v17, %v313_v21 }
  0xf9   : > { %319 = vst [vmem:[%s188_s21 + $0x8] sm:$0xff] %v315_v24  ;;  %321 = vst [vmem:[%s188_s21 + $0x18] sm:$0xff] %v317_v25 }
  0xfa   : > { %512 = shalt.err (!%p509_p5)
}
  0xfb   : > { %s513_s7 = scalar_lea.hbm %s685_s15, 512  ;;  %s517_s10 = scalar_lea.hbm %s738_s3, 1024 }
  0xfc   : > { %p514_p6 = scmp.ne.s32.totalorder %s685_s15, %s513_s7  ;;  %p518_p10 = scmp.lt.u32.totalorder %s685_s15, %s738_s3 }
  0xfd   : > { %p519_p11 = scmp.lt.u32.totalorder %s517_s10, %s513_s7  ;;  %p521_p13 = scmp.lt.u32.totalorder %s513_s7, %s685_s15 }
  0xfe   : > { %p515_p7 = pnand %p514_p6, %p644_p4 }
  0xff   : > { %p520_p12 = por %p519_p11, %p518_p10 }
 0x100   : > { %p516_p9 = pneg %p515_p7 }
 0x101   : > { %p522_p0 = por %p521_p13, %p520_p12 }
 0x103   : > { %p523_p1 = pnand %p522_p0, %p516_p9 }
 0x105   : > { %526 = shalt.err (!%p523_p1)
}
 0x106   : > { %s582_s19 = smov 256   ;;  %s583_s21 = smov 16  }
 0x107   : > { %438 = dma.vmem_to_hbm [thread:$0]  (%p644_p4), %s680_s23, 512, %s685_s15, %s689_s29, %s582_s19, %s582_s19, %s583_s21  }
 0x108 PF: > { %p444_p2 = scmp.ge.s32.totalorder %s577_s17, 2  ;;  %s353_s26 = sand.u32 1, %s557_s12  }
 0x109   : > { %s354_s27 = scalar_lea.sflag [#allocation3], %s353_s26 }
 0x10a   : > { %p441_p3 = pnand %p444_p2, %p651_p8 }
 0x10c   : > { %552 = dma.done.wait (!%p441_p3), %s354_s27, 512  }
 0x10d   : > { %554 = vsyncadd (!%p441_p3), %s354_s27, 4294966784  ;;  %s16_s17 = sadd.s32 1, %s577_s17   ;;  %s741_s12 = smov %s561_s13 }
 0x10e   : > { %p13_p5 = scmp.ge.s32.totalorder %s16_s17, 4   ;;  %s742_s13 = smov %s565_s14 }
 0x10f   : > { %s743_s14 = smov %s657_s25  ;;  %s744_s15 = smov %s573_s16 }
 0x110   : > { %s745_s16 = smov %s747_s20  ;;  %15 = sbr.rel (!%p13_p5) target bundleno = 4 (0x4), region = 67 }
 0x117   :  { %359 = vsyncpa [#allocation3], 1 }
 0x118   :  { %361 = vsyncpa [#allocation3 + $0x1], 1 }

</bundles_post_ra>
